<compile_context>
chip_gen: v5e
topology: v5e:2x2
jax: 0.10.0
libtpu: 0.0.40
codegen_flags: <defaults>
</compile_context>

<pallas_src>
import jax
import jax.numpy as jnp
from jax.experimental import pallas as pl
from jax.experimental.pallas import tpu as pltpu


_SQRT_HALF = 0.7071067811865476


def _mlp_head_kernel(x_ref, w1_ref, b1_ref, w2_ref, b2_ref, o_ref, h_ref):
    # Grid = (i: row tiles, j: vocab tiles); j is the inner (fast) axis.
    #   x_ref : (tm, d_model)   row tile of flattened input
    #   w1_ref: (d_model, ff)   full first-layer weight (grid-invariant)
    #   b1_ref: (1, ff)
    #   w2_ref: (ff, tn)        vocab tile of second-layer weight
    #   b2_ref: (1, tn)
    #   o_ref : (tm, tn)
    #   h_ref : (tm, ff) f32    VMEM scratch: gelu(x @ W1 + b1) for this row tile

    # Linear1 + GELU only on the first vocab tile of each row tile.
    @pl.when(pl.program_id(1) == 0)
    def _():
        h = jnp.dot(x_ref[...], w1_ref[...], preferred_element_type=jnp.float32)
        h = h + b1_ref[...].astype(jnp.float32)
        # TODO(synk): dropout is identity here (eval mode); torch training-mode
        # RNG stream cannot be reproduced bit-exactly.
        # Exact erf-based GELU, matching F.gelu(approximate='none').
        h_ref[...] = 0.5 * h * (1.0 + jax.lax.erf(h * jnp.float32(_SQRT_HALF)))

    # Linear2 on the cached activation: (tm, ff) @ (ff, tn) + b2
    h = h_ref[...].astype(w2_ref.dtype)
    out = jnp.dot(h, w2_ref[...], preferred_element_type=jnp.float32)
    out = out + b2_ref[...].astype(jnp.float32)
    o_ref[...] = out.astype(o_ref.dtype)


def _round_up(x, m):
    return (x + m - 1) // m * m


def classification_forward(x, w1, b1, w2, b2, *, tm=256, tn=512):
    """Pallas forward of the `Classification` head (eval mode).

    x : (..., d_model)
    w1: (d_model, ff)      (transposed vs torch nn.Linear.weight)
    b1: (ff,)
    w2: (ff, vocab)        (transposed vs torch)
    b2: (vocab,)
    returns: (..., vocab), dtype = x.dtype
    """
    d_model = x.shape[-1]
    ff = w1.shape[1]
    vocab = w2.shape[1]
    lead_shape = x.shape[:-1]

    x2d = x.reshape(-1, d_model)
    M = x2d.shape[0]

    # MXU-friendly tiles, clamped for small problems (no divisibility assert).
    tm = max(8, min(tm, _round_up(M, 8)))
    tn = max(128, min(tn, _round_up(vocab, 128)))
    Mp = _round_up(M, tm)
    Np = _round_up(vocab, tn)

    if Mp != M:
        x2d = jnp.pad(x2d, ((0, Mp - M), (0, 0)))
    b1_2d = b1.reshape(1, ff)
    b2_2d = b2.reshape(1, vocab)
    if Np != vocab:
        w2 = jnp.pad(w2, ((0, 0), (0, Np - vocab)))
        b2_2d = jnp.pad(b2_2d, ((0, 0), (0, Np - vocab)))

    grid = (Mp // tm, Np // tn)

    # Scoped-VMEM limit sized to the tile working set (double-buffered inputs
    # + f32 h scratch), with headroom, instead of the default 16/32 MiB.
    def _isz(a):
        return jnp.dtype(a.dtype).itemsize

    est = 2 * (tm * d_model * _isz(x2d)
               + d_model * ff * _isz(w1) + ff * _isz(b1_2d)
               + ff * tn * _isz(w2) + tn * _isz(b2_2d)
               + tm * tn * _isz(x2d))
    est += tm * ff * 4  # f32 activation scratch
    vmem_limit = int(min(max(est * 3 // 2, 32 * 2**20), 100 * 2**20))

    out = pl.pallas_call(
        _mlp_head_kernel,
        out_shape=jax.ShapeDtypeStruct((Mp, Np), x.dtype),
        grid_spec=pltpu.PrefetchScalarGridSpec(
            num_scalar_prefetch=0,
            grid=grid,
            in_specs=[
                pl.BlockSpec((tm, d_model), lambda i, j: (i, 0)),   # x row tile
                pl.BlockSpec((d_model, ff), lambda i, j: (0, 0)),   # W1 (invariant)
                pl.BlockSpec((1, ff),       lambda i, j: (0, 0)),   # b1 (invariant)
                pl.BlockSpec((ff, tn),      lambda i, j: (0, j)),   # W2 vocab tile
                pl.BlockSpec((1, tn),       lambda i, j: (0, j)),   # b2 vocab tile
            ],
            out_specs=pl.BlockSpec((tm, tn), lambda i, j: (i, j)),
            scratch_shapes=[pltpu.VMEM((tm, ff), jnp.float32)],
        ),
        compiler_params=pltpu.CompilerParams(
            dimension_semantics=("parallel", "arbitrary"),
            vmem_limit_bytes=vmem_limit,
        ),
    )(x2d, w1, b1_2d, w2, b2_2d)

    out = out[:M, :vocab]
    return out.reshape(*lead_shape, vocab)


def _reference(x, w1, b1, w2, b2):
    x = x.astype(jnp.float32)
    h = x @ w1.astype(jnp.float32) + b1.astype(jnp.float32)
    h = 0.5 * h * (1.0 + jax.lax.erf(h * jnp.float32(_SQRT_HALF)))
    return h @ w2.astype(jnp.float32) + b2.astype(jnp.float32)


if __name__ == "__main__":
    # Small shapes consistent with the module's forward.
    batch, seq = 2, 8
    d_model, dim_feedforward, vocab_size = 32, 128, 256

    key = jax.random.PRNGKey(0)
    kx, k1, k2, k3, k4 = jax.random.split(key, 5)

    x = jax.random.normal(kx, (batch, seq, d_model), dtype=jnp.float32)
    # "Linear" parameters stored transposed vs torch's (out, in) layout.
    w1 = jax.random.normal(k1, (d_model, dim_feedforward), dtype=jnp.float32) * 0.05
    b1 = jax.random.normal(k2, (dim_feedforward,), dtype=jnp.float32) * 0.05
    w2 = jax.random.normal(k3, (dim_feedforward, vocab_size), dtype=jnp.float32) * 0.05
    b2 = jax.random.normal(k4, (vocab_size,), dtype=jnp.float32) * 0.05

    # --- f32 path ---
    y = classification_forward(x, w1, b1, w2, b2)
    y = jax.block_until_ready(y)
    y_ref = _reference(x.reshape(-1, d_model), w1, b1, w2, b2).reshape(
        batch, seq, vocab_size)
    assert y.shape == (batch, seq, vocab_size)
    assert jnp.allclose(y, y_ref, atol=1e-3, rtol=1e-3)

    # --- ragged shapes (M not multiple of 8, vocab not multiple of 128) ---
    xr = x[:, :7, :]
    w2r, b2r = w2[:, :200], b2[:200]
    yr = jax.block_until_ready(classification_forward(xr, w1, b1, w2r, b2r))
    yr_ref = _reference(xr.reshape(-1, d_model), w1, b1, w2r, b2r).reshape(
        batch, 7, 200)
    assert yr.shape == (batch, 7, 200)
    assert jnp.allclose(yr, yr_ref, atol=1e-3, rtol=1e-3)

    # --- bf16 operands (f32 accumulation inside the kernel) ---
    xb = x.astype(jnp.bfloat16)
    w1b, b1b = w1.astype(jnp.bfloat16), b1.astype(jnp.bfloat16)
    w2b, b2b = w2.astype(jnp.bfloat16), b2.astype(jnp.bfloat16)
    yb = jax.block_until_ready(classification_forward(xb, w1b, b1b, w2b, b2b))
    yb_ref = _reference(xb.reshape(-1, d_model), w1b, b1b, w2b, b2b).reshape(
        batch, seq, vocab_size)
    assert jnp.allclose(yb.astype(jnp.float32), yb_ref, atol=5e-2, rtol=5e-2)

    print("KERNEL_OK")
</pallas_src>

<mosaic_0001>
module attributes {stable_mosaic.version = 11 : i64} {
  func.func @_mlp_head_kernel(%arg0: i32, %arg1: i32, %arg2: memref<16x32xf32, #tpu.memory_space<vmem>>, %arg3: memref<32x128xf32, #tpu.memory_space<vmem>>, %arg4: memref<1x128xf32, #tpu.memory_space<vmem>>, %arg5: memref<128x256xf32, #tpu.memory_space<vmem>>, %arg6: memref<1x256xf32, #tpu.memory_space<vmem>>, %arg7: memref<16x256xf32, #tpu.memory_space<vmem>>, %arg8: memref<16x128xf32, #tpu.memory_space<vmem>>) attributes {dimension_semantics = [#tpu.dimension_semantics<parallel>, #tpu.dimension_semantics<arbitrary>], iteration_bounds = array<i64: 1, 1>, scalar_prefetch = 0 : i64, scratch_operands = 1 : i64, tpu.core_type = #tpu.core_type<tc>, window_params = [{transform_indices = @transform_0, window_bounds = array<i64: 16, 32>}, {pipeline_mode = #tpu.pipeline_mode<synchronous>, transform_indices = @transform_1, window_bounds = array<i64: 32, 128>}, {pipeline_mode = #tpu.pipeline_mode<synchronous>, transform_indices = @transform_2, window_bounds = array<i64: 1, 128>}, {transform_indices = @transform_3, window_bounds = array<i64: 128, 256>}, {transform_indices = @transform_4, window_bounds = array<i64: 1, 256>}, {transform_indices = @transform_5, window_bounds = array<i64: 16, 256>}]} {
    %c0_i32 = arith.constant 0 : i32
    %0 = arith.cmpi eq, %arg1, %c0_i32 : i32
    %1 = arith.extui %0 : i1 to i32
    %c0_i32_0 = arith.constant 0 : i32
    %2 = arith.cmpi ne, %1, %c0_i32_0 : i32
    scf.if %2 {
      %c0_8 = arith.constant 0 : index
      %c0_9 = arith.constant 0 : index
      %10 = vector.load %arg2[%c0_8, %c0_9] : memref<16x32xf32, #tpu.memory_space<vmem>>, vector<16x32xf32>
      %c0_10 = arith.constant 0 : index
      %c0_11 = arith.constant 0 : index
      %11 = vector.load %arg3[%c0_10, %c0_11] : memref<32x128xf32, #tpu.memory_space<vmem>>, vector<32x128xf32>
      %cst_12 = arith.constant dense<0.000000e+00> : vector<16x128xf32>
      %12 = tpu.matmul %10, %11, %cst_12 {dimension_numbers = #tpu.dot_dimension_numbers<[1], [0], [0], [1], [0, 0, 1, 1], [], []>} : vector<16x32xf32>, vector<32x128xf32>, vector<16x128xf32> -> vector<16x128xf32>
      %c0_13 = arith.constant 0 : index
      %c0_14 = arith.constant 0 : index
      %13 = vector.load %arg4[%c0_13, %c0_14] : memref<1x128xf32, #tpu.memory_space<vmem>>, vector<1x128xf32>
      %14 = vector.broadcast %13 : vector<1x128xf32> to vector<16x128xf32>
      %15 = arith.addf %12, %14 : vector<16x128xf32>
      %cst_15 = arith.constant 5.000000e-01 : f32
      %16 = vector.broadcast %cst_15 : f32 to vector<16x128xf32>
      %17 = arith.mulf %16, %15 : vector<16x128xf32>
      %cst_16 = arith.constant 0.707106769 : f32
      %18 = vector.broadcast %cst_16 : f32 to vector<16x128xf32>
      %19 = arith.mulf %15, %18 : vector<16x128xf32>
      %20 = math.erf %19 : vector<16x128xf32>
      %cst_17 = arith.constant 1.000000e+00 : f32
      %21 = vector.broadcast %cst_17 : f32 to vector<16x128xf32>
      %22 = arith.addf %21, %20 : vector<16x128xf32>
      %23 = arith.mulf %17, %22 : vector<16x128xf32>
      %c0_18 = arith.constant 0 : index
      %c0_19 = arith.constant 0 : index
      %24 = vector.load %arg8[%c0_18, %c0_19] : memref<16x128xf32, #tpu.memory_space<vmem>>, vector<16x128xf32>
      tpu.vector_store %arg8[%c0_18, %c0_19], %23 {strides = array<i32>} : memref<16x128xf32, #tpu.memory_space<vmem>>, vector<16x128xf32>,
    } else {
    }
    %c0 = arith.constant 0 : index
    %c0_1 = arith.constant 0 : index
    %3 = vector.load %arg8[%c0, %c0_1] : memref<16x128xf32, #tpu.memory_space<vmem>>, vector<16x128xf32>
    %c0_2 = arith.constant 0 : index
    %c0_3 = arith.constant 0 : index
    %4 = vector.load %arg5[%c0_2, %c0_3] : memref<128x256xf32, #tpu.memory_space<vmem>>, vector<128x256xf32>
    %cst = arith.constant dense<0.000000e+00> : vector<16x256xf32>
    %5 = tpu.matmul %3, %4, %cst {dimension_numbers = #tpu.dot_dimension_numbers<[1], [0], [0], [1], [0, 0, 1, 1], [], []>} : vector<16x128xf32>, vector<128x256xf32>, vector<16x256xf32> -> vector<16x256xf32>
    %c0_4 = arith.constant 0 : index
    %c0_5 = arith.constant 0 : index
    %6 = vector.load %arg6[%c0_4, %c0_5] : memref<1x256xf32, #tpu.memory_space<vmem>>, vector<1x256xf32>
    %7 = vector.broadcast %6 : vector<1x256xf32> to vector<16x256xf32>
    %8 = arith.addf %5, %7 : vector<16x256xf32>
    %c0_6 = arith.constant 0 : index
    %c0_7 = arith.constant 0 : index
    %9 = vector.load %arg7[%c0_6, %c0_7] : memref<16x256xf32, #tpu.memory_space<vmem>>, vector<16x256xf32>
    tpu.vector_store %arg7[%c0_6, %c0_7], %8 {strides = array<i32>} : memref<16x256xf32, #tpu.memory_space<vmem>>, vector<16x256xf32>,
    return
  }
  func.func @transform_0(%arg0: i32, %arg1: i32) -> (i32, i32) {
    %c0_i32 = arith.constant 0 : i32
    %c0_i32_0 = arith.constant 0 : i32
    return %arg0, %c0_i32 : i32, i32
  }
  func.func @transform_1(%arg0: i32, %arg1: i32) -> (i32, i32) {
    %c0_i32 = arith.constant 0 : i32
    %c0_i32_0 = arith.constant 0 : i32
    %c0_i32_1 = arith.constant 0 : i32
    return %c0_i32, %c0_i32_0 : i32, i32
  }
  func.func @transform_2(%arg0: i32, %arg1: i32) -> (i32, i32) {
    %c0_i32 = arith.constant 0 : i32
    %c0_i32_0 = arith.constant 0 : i32
    %c0_i32_1 = arith.constant 0 : i32
    return %c0_i32, %c0_i32_0 : i32, i32
  }
  func.func @transform_3(%arg0: i32, %arg1: i32) -> (i32, i32) {
    %c0_i32 = arith.constant 0 : i32
    %c0_i32_0 = arith.constant 0 : i32
    return %c0_i32, %arg1 : i32, i32
  }
  func.func @transform_4(%arg0: i32, %arg1: i32) -> (i32, i32) {
    %c0_i32 = arith.constant 0 : i32
    %c0_i32_0 = arith.constant 0 : i32
    return %c0_i32, %arg1 : i32, i32
  }
  func.func @transform_5(%arg0: i32, %arg1: i32) -> (i32, i32) {
    %c0_i32 = arith.constant 0 : i32
    return %arg0, %arg1 : i32, i32
  }
}

</mosaic_0001>

<bundles_post_ra>
// kernel: tpu_custom_call.1
= control target key start
LH: loop header
LB: loop body
LE: loop exit
PB: predicated region body
PF: predicated region fallthrough
CT: control target
= control target key end

     0   :  { %10 = vsyncpa [#allocation4], 0  ;;  %s539_s0 = inlined_call_operand.hbm [shape: f32[16,32], index: 0, kind: input, shape index: {}]   ;;  %s540_s1 = inlined_call_operand.hbm [shape: f32[32,128], index: 1, kind: input, shape index: {}]   ;;  %s541_s2 = inlined_call_operand.vmem [shape: f32[1,128], index: 2, kind: input, shape index: {}]   ;;  %s542_s3 = inlined_call_operand.hbm [shape: f32[128,256], index: 3, kind: input, shape index: {}]   ;;  %s543_s4 = inlined_call_operand.vmem [shape: f32[1,256], index: 4, kind: input, shape index: {}]   ;;  %s544_s5 = inlined_call_operand.hbm [shape: f32[16,256], index: 5, kind: output, shape index: {}]  }
   0x1   :  { %11 = vsyncpa [#allocation7], 0 }
   0x2   :  { %12 = vsyncpa [#allocation5], 0  ;;  %s30_s20 = sshll.u32 %s540_s1, 4  ;;  %s447_s21 = smov [#allocation6]   ;;  %s31_s20 = int_to_ptr.hbm [resolvable:$true] %s30_s20 }
   0x3   :  { %s32_s22 = sshll.u32 %s447_s21, 4  ;;  %s17_s25 = sshll.u32 %s539_s0, 4  ;;  %s33_s22 = int_to_ptr.vmem [resolvable:$true] %s32_s22  ;;  %s18_s25 = int_to_ptr.hbm [resolvable:$true] %s17_s25 }
   0x4   :  { %s448_s26 = smov 128   ;;  %s449_s27 = smov 8  }
   0x5   :  { %38 = dma.hbm_to_vmem [thread:$0]  %s31_s20, 512, %s33_s22, [#allocation7], %s448_s26, %s448_s26, %s449_s27  }
   0x6   :  { %s450_s28 = smov [#allocation3]   ;;  %s45_s7 = sshll.u32 %s542_s3, 4  ;;  %s46_s7 = int_to_ptr.hbm [resolvable:$true] %s45_s7 }
   0x7   :  { %s19_s29 = sshll.u32 %s450_s28, 4  ;;  %s451_s1 = smov [#allocation8]   ;;  %s20_s29 = int_to_ptr.vmem [resolvable:$true] %s19_s29 }
   0x8   :  { %25 = dma.hbm_to_vmem [thread:$0]  %s18_s25, 256, %s20_s29, [#allocation4], %s448_s26, %s448_s26, %s449_s27  }
   0x9   :  { %s47_s8 = sshll.u32 %s451_s1, 4  ;;  %s452_s9 = smov 256   ;;  %s48_s8 = int_to_ptr.vmem [resolvable:$true] %s47_s8 }
   0xa   :  { %s453_s10 = smov 16  }
   0xb   :  { %53 = dma.hbm_to_vmem [thread:$0]  %s46_s7, 4096, %s48_s8, [#allocation7], %s452_s9, %s452_s9, %s453_s10  }
   0xc   :  { %441 = dma.done.wait [#allocation4], 256  }
   0xd   :  { %442 = vsyncadd [#allocation4], 4294967040 }
   0xe   :  { %443 = dma.done.wait [#allocation7], 4608  }
   0xf   :  { %444 = vsyncadd [#allocation7], 4294962688  ;;  %v77_v0 = vld [vmem:[#allocation6 + $0x18] sm:$0xff]  ;;  %v76_v1 = vld [vmem:[#allocation6 + $0x10] sm:$0xff]  ;;  %vm82_vm0 = vcmask 261120   ;;  %s454_s12 = smov [#allocation9]  }
  0x10   :  { %101 = vmatpush.msra.mxu0 %v77_v0  ;;  %v75_v2 = vld [vmem:[#allocation6 + $0x8] sm:$0xff]  ;;  %v74_v3 = vld [vmem:[#allocation6] sm:$0xff]  ;;  %v72_v4 = vld [vmem:[#allocation3] sm:$0xff]  ;;  %s296_s13 = sshll.u32 %s454_s12, 4  ;;  %s298_s16 = sshll.u32 %s544_s5, 4  ;;  %s297_s13 = int_to_ptr.vmem [resolvable:$true] %s296_s13  ;;  %s299_s16 = int_to_ptr.hbm [resolvable:$true] %s298_s16 }
  0x11   :  { %v73_v5 = vld [vmem:[#allocation3 + $0x8] sm:$0xff]  ;;  %v234_v6 = vld [vmem:[#allocation8 + $0xf0] sm:$0xff]  ;;  %v232_v8 = vld [vmem:[#allocation8 + $0xe0] sm:$0xff] }
  0x12   :  { %102 = vmatpush.msra.mxu0 %v76_v1  ;;  %v235_v7 = vld [vmem:[#allocation8 + $0xf8] sm:$0xff]  ;;  %242 = vmatpush.msra.mxu1 %v234_v6  ;;  %v233_v9 = vld [vmem:[#allocation8 + $0xe8] sm:$0xff]  ;;  %v230_v10 = vld [vmem:[#allocation8 + $0xd0] sm:$0xff] }
  0x13   :  { %265 = vmatpush.msra.mxu2 %v235_v7  ;;  %316 = vmatpush.msra.mxu3 %v234_v6  ;;  %v231_v11 = vld [vmem:[#allocation8 + $0xd8] sm:$0xff]  ;;  %v228_v12 = vld [vmem:[#allocation8 + $0xc0] sm:$0xff]  ;;  %v229_v13 = vld [vmem:[#allocation8 + $0xc8] sm:$0xff] }
  0x14   :  { %103 = vmatpush.msra.mxu0 %v75_v2  ;;  %243 = vmatpush.msra.mxu1 %v232_v8  ;;  %v340_v14 = vld [vmem:[%s541_s2] ss:$0 sm:$0xff]  ;;  %v227_v16 = vld [vmem:[#allocation8 + $0xb8] sm:$0xff]  ;;  %v224_v18 = vld [vmem:[#allocation8 + $0xa0] sm:$0xff] }
  0x15   :  { %266 = vmatpush.msra.mxu2 %v233_v9  ;;  %317 = vmatpush.msra.mxu3 %v232_v8  ;;  %v226_v15 = vld [vmem:[#allocation8 + $0xb0] sm:$0xff]  ;;  %v225_v19 = vld [vmem:[#allocation8 + $0xa8] sm:$0xff]  ;;  %v223_v22 = vld [vmem:[#allocation8 + $0x98] sm:$0xff] }
  0x16   :  { %104 = vmatpush.msra.mxu0 %v74_v3  ;;  %244 = vmatpush.msra.mxu1 %v230_v10  ;;  %v222_v21 = vld [vmem:[#allocation8 + $0x90] sm:$0xff]  ;;  %v220_v24 = vld [vmem:[#allocation8 + $0x80] sm:$0xff]  ;;  %v221_v25 = vld [vmem:[#allocation8 + $0x88] sm:$0xff] }
  0x17   :  { %312 = vmatmul.msk.f32.vlgmr.msra.gmra.mxu0 %vm82_vm0, %v72_v4  ;;  %267 = vmatpush.msra.mxu2 %v231_v11  ;;  %v218_v27 = vld [vmem:[#allocation8 + $0x70] sm:$0xff]  ;;  %v219_v28 = vld [vmem:[#allocation8 + $0x78] sm:$0xff]  ;;  %v216_v29 = vld [vmem:[#allocation8 + $0x60] sm:$0xff] }
  0x18   :  { %318 = vmatpush.msra.mxu3 %v230_v10  ;;  %245 = vmatpush.msra.mxu1 %v228_v12  ;;  %v217_v30 = vld [vmem:[#allocation8 + $0x68] sm:$0xff]  ;;  %v214_v33 = vld [vmem:[#allocation8 + $0x50] sm:$0xff]  ;;  %v215_v34 = vld [vmem:[#allocation8 + $0x58] sm:$0xff] }
  0x19   :  { %268 = vmatpush.msra.mxu2 %v229_v13  ;;  %v212_v37 = vld [vmem:[#allocation8 + $0x40] sm:$0xff]  ;;  %v213_v38 = vld [vmem:[#allocation8 + $0x48] sm:$0xff]  ;;  %v210_v42 = vld [vmem:[#allocation8 + $0x30] sm:$0xff] }
  0x1a   :  { %319 = vmatpush.msra.mxu3 %v228_v12  ;;  %246 = vmatpush.msra.mxu1 %v226_v15  ;;  %v211_v43 = vld [vmem:[#allocation8 + $0x38] sm:$0xff]  ;;  %v208_v47 = vld [vmem:[#allocation8 + $0x20] sm:$0xff]  ;;  %v209_v48 = vld [vmem:[#allocation8 + $0x28] sm:$0xff] }
  0x1b   :  { %269 = vmatpush.msra.mxu2 %v227_v16  ;;  %v206_v51 = vld [vmem:[#allocation8 + $0x10] sm:$0xff]  ;;  %v207_v52 = vld [vmem:[#allocation8 + $0x18] sm:$0xff]  ;;  %v204_v57 = vld [vmem:[#allocation8] sm:$0xff] }
  0x1c   :  { %320 = vmatpush.msra.mxu3 %v226_v15  ;;  %247 = vmatpush.msra.mxu1 %v224_v18  ;;  %v205_v58 = vld [vmem:[#allocation8 + $0x8] sm:$0xff] }
  0x1d   :  { %270 = vmatpush.msra.mxu2 %v225_v19 }
  0x1e   :  { %321 = vmatpush.msra.mxu3 %v224_v18  ;;  %248 = vmatpush.msra.mxu1 %v222_v21 }
  0x1f   :  { %313 = vmatmul.msk.f32.gmra.mxu0 %vm82_vm0, %v73_v5  ;;  %271 = vmatpush.msra.mxu2 %v223_v22 }
  0x20   :  { %322 = vmatpush.msra.mxu3 %v222_v21  ;;  %249 = vmatpush.msra.mxu1 %v220_v24 }
  0x21   :  { %272 = vmatpush.msra.mxu2 %v221_v25 }
  0x22   :  { %323 = vmatpush.msra.mxu3 %v220_v24  ;;  %250 = vmatpush.msra.mxu1 %v218_v27 }
  0x23   :  { %273 = vmatpush.msra.mxu2 %v219_v28 }
  0x24   :  { %324 = vmatpush.msra.mxu3 %v218_v27  ;;  %251 = vmatpush.msra.mxu1 %v216_v29 }
  0x25   :  { %274 = vmatpush.msra.mxu2 %v217_v30 }
  0x26   :  { %325 = vmatpush.msra.mxu3 %v216_v29  ;;  %252 = vmatpush.msra.mxu1 %v214_v33 }
  0x27   :  { %275 = vmatpush.msra.mxu2 %v215_v34 }
  0x28   :  { %326 = vmatpush.msra.mxu3 %v214_v33  ;;  %253 = vmatpush.msra.mxu1 %v212_v37 }
  0x29   :  { %276 = vmatpush.msra.mxu2 %v213_v38 }
  0x2a   :  { %327 = vmatpush.msra.mxu3 %v212_v37  ;;  %254 = vmatpush.msra.mxu1 %v210_v42 }
  0x2b   :  { %277 = vmatpush.msra.mxu2 %v211_v43 }
  0x2c   :  { %328 = vmatpush.msra.mxu3 %v210_v42  ;;  %255 = vmatpush.msra.mxu1 %v208_v47 }
  0x2d   :  { %278 = vmatpush.msra.mxu2 %v209_v48 }
  0x2e   :  { %329 = vmatpush.msra.mxu3 %v208_v47  ;;  %256 = vmatpush.msra.mxu1 %v206_v51 }
  0x2f   :  { %279 = vmatpush.msra.mxu2 %v207_v52 }
  0x30   :  { %330 = vmatpush.msra.mxu3 %v206_v51  ;;  %257 = vmatpush.msra.mxu1 %v204_v57 }
  0x31   :  { %280 = vmatpush.msra.mxu2 %v205_v58 }
  0x32   :  { %331 = vmatpush.msra.mxu3 %v204_v57 }
  0x94   :  { %v106_v17 = vpop.f32.mrf.mxu0 }
  0x95   :  { %v500_v20 = vadd.f32 %v340_v14, %v106_v17 }
  0x97   :  { %v503_v23 = vmul.f32 0.70710677, %v500_v20 }
  0x99   :  { %v116_v26 = vmul.f32 %v503_v23, %v503_v23 }
  0x9b   :  { %v507_v31 = vmin.f32 %v116_v26, 16.0 }
  0x9c   :  { %v109_v32 = vpop.f32.mrf.mxu0 }
  0x9d   :  { %v118_v35 = vmul.f32 2.1237322e-06, %v507_v31  ;;  %v510_v36 = vadd.f32 %v340_v14, %v109_v32  ;;  %v129_v39 = vmul.f32 3.8918573e-05, %v507_v31 }
  0x9f   :  { %v119_v40 = vadd.f32 0.00028619796, %v118_v35  ;;  %v514_v41 = vmul.f32 0.70710677, %v510_v36  ;;  %v130_v44 = vadd.f32 0.001143296, %v129_v39 }
  0xa0   :  { %v113_v57 = vmul.f32 0.5, %v510_v36 }
  0xa1   :  { %v120_v45 = vmul.f32 %v119_v40, %v507_v31  ;;  %v156_v46 = vmul.f32 %v514_v41, %v514_v41  ;;  %v131_v49 = vmul.f32 %v130_v44, %v507_v31 }
  0xa3   :  { %v157_v50 = vmin.f32 %v156_v46, 16.0  ;;  %v132_v53 = vadd.f32 0.014752088, %v131_v49  ;;  %v121_v54 = vadd.f32 0.0036580483, %v120_v45  ;;  %v112_v49 = vmul.f32 0.5, %v500_v20 }
  0xa4   :  { %v236_v20 = vld [vmem:[%s543_s4] sm:$0x3] }
  0xa5   :  { %v158_v55 = vmul.f32 2.1237322e-06, %v157_v50  ;;  %v169_v56 = vmul.f32 3.8918573e-05, %v157_v50  ;;  %v133_v59 = vmul.f32 %v132_v53, %v507_v31  ;;  %v122_v63 = vmul.f32 %v121_v54, %v507_v31 }
  0xa7   :  { %v159_v60 = vadd.f32 0.00028619796, %v158_v55  ;;  %v170_v61 = vadd.f32 0.001143296, %v169_v56  ;;  %v134_v62 = vadd.f32 0.112945676, %v133_v59 }
  0xa8   :  { %v123_v6 = vadd.f32 0.05243302, %v122_v63 }
  0xa9   :  { %v160_v0 = vmul.f32 %v159_v60, %v157_v50  ;;  %v171_v1 = vmul.f32 %v170_v61, %v157_v50  ;;  %v135_v2 = vmul.f32 %v134_v62, %v507_v31  ;;  %v238_v60 = vperm.slane %v236_v20, 0 }
  0xaa   :  { %v124_v12 = vmul.f32 %v123_v6, %v507_v31  ;;  %v239_v62 = vperm.slane %v236_v20, 1 }
  0xab   :  { %v172_v3 = vadd.f32 0.014752088, %v171_v1  ;;  %v161_v4 = vadd.f32 0.0036580483, %v160_v0  ;;  %v136_v5 = vadd.f32 0.4994258, %v135_v2 }
  0xac   :  { %v125_v16 = vadd.f32 0.18741608, %v124_v12 }
  0xad   :  { %v173_v7 = vmul.f32 %v172_v3, %v157_v50  ;;  %v137_v8 = vmul.f32 %v136_v5, %v507_v31  ;;  %v162_v10 = vmul.f32 %v161_v4, %v157_v50 }
  0xae   :  { %v126_v22 = vmul.f32 %v125_v16, %v507_v31 }
  0xaf   :  { %v174_v9 = vadd.f32 0.112945676, %v173_v7  ;;  %v138_v11 = vadd.f32 1.0, %v137_v8  ;;  %v163_v15 = vadd.f32 0.05243302, %v162_v10 }
  0xb0   :  { %v127_v28 = vadd.f32 1.1283791, %v126_v22 }
  0xb1   :  { %v175_v13 = vmul.f32 %v174_v9, %v157_v50  ;;  %341 = vrcp.f32 %v138_v11  ;;  %v164_v21 = vmul.f32 %v163_v15, %v157_v50  ;;  %v150_v27 = vand.u32 2147483648, %v138_v11 }
  0xb2   :  { %v148_v30 = vand.u32 2147483647, %v138_v11  ;;  %vm144_vm2 = vweird.f32 %v138_v11  ;;  %v128_v38 = vmul.f32 %v127_v28, %v503_v23 }
  0xb3   :  { %v176_v14 = vadd.f32 0.4994258, %v175_v13  ;;  %v165_v26 = vadd.f32 0.18741608, %v164_v21  ;;  %v151_v35 = vor.u32 1.1754944e-38, %v150_v27 }
  0xb4   :  { %vm149_vm4 = vcmp.eq.f32.partialorder %v148_v30, 8.507059e+37 }
  0xb5   :  { %v177_v17 = vmul.f32 %v176_v14, %v157_v50  ;;  %v166_v34 = vmul.f32 %v165_v26, %v157_v50 }
  0xb7   :  { %v178_v18 = vadd.f32 1.0, %v177_v17  ;;  %v342_v19 = vpop.eup %341  ;;  %v167_v44 = vadd.f32 1.1283791, %v166_v34 }
  0xb8   :  { %v140_v24 = vmul.f32 %v342_v19, %v138_v11  ;;  %vm145_vm1 = vweird.f32 %v342_v19 }
  0xb9   :  { %343 = vrcp.f32 %v178_v18  ;;  %vm146_vm3 = vmor %vm144_vm2, %vm145_vm1  ;;  %v190_v43 = vand.u32 2147483648, %v178_v18  ;;  %v188_v46 = vand.u32 2147483647, %v178_v18  ;;  %vm184_vm6 = vweird.f32 %v178_v18 }
  0xba   :  { %v141_v25 = vsub.f32 1.0, %v140_v24  ;;  %v168_v23 = vmul.f32 %v167_v44, %v514_v41 }
  0xbb   :  { %v191_v51 = vor.u32 1.1754944e-38, %v190_v43  ;;  %vm189_vm8 = vcmp.eq.f32.partialorder %v188_v46, 8.507059e+37 }
  0xbc   :  { %v142_v29 = vmul.f32 %v342_v19, %v141_v25 }
  0xbe   :  { %v143_v33 = vadd.f32 %v342_v19, %v142_v29 }
  0xbf   :  { %v344_v32 = vpop.eup %343 }
  0xc0   :  { %v180_v37 = vmul.f32 %v344_v32, %v178_v18  ;;  %v147_v39 = vsel %vm146_vm3, %v342_v19, %v143_v33  ;;  %vm185_vm5 = vweird.f32 %v344_v32 }
  0xc1   :  { %v152_v31 = vsel %vm149_vm4, %v151_v35, %v147_v39  ;;  %vm186_vm7 = vmor %vm184_vm6, %vm185_vm5 }
  0xc2   :  { %v181_v40 = vsub.f32 1.0, %v180_v37  ;;  %v153_v42 = vmul.f32 %v152_v31, %v128_v38 }
  0xc4   :  { %v182_v45 = vmul.f32 %v344_v32, %v181_v40  ;;  %v314_v47 = vclamps-f32 %v153_v42, 1.0 }
  0xc6   :  { %v183_v48 = vadd.f32 %v344_v32, %v182_v45  ;;  %v196_v50 = vadd.f32 1.0, %v314_v47 }
  0xc8   :  { %v187_v52 = vsel %vm186_vm7, %v344_v32, %v183_v48  ;;  %v198_v53 = vmul.f32 %v196_v50, %v112_v49 }
  0xc9   :  { %v192_v54 = vsel %vm189_vm8, %v191_v51, %v187_v52 }
  0xca   :  { %v193_v55 = vmul.f32 %v192_v54, %v168_v23  ;;  %258 = vmatmul.f32.vlgmr.msra.gmra.mxu1 %v198_v53  ;;  %281 = vmatmul.f32.vlgmr.msra.gmra.mxu2 %v198_v53 }
  0xcc   :  { %v315_v56 = vclamps-f32 %v193_v55, 1.0 }
  0xce   :  { %v197_v58 = vadd.f32 1.0, %v315_v56 }
  0xd0   :  { %v199_v59 = vmul.f32 %v197_v58, %v113_v57 }
  0xd2   :  { %261 = vmatmul.f32.vlgmr.msra.gmra.mxu3 %v199_v59  ;;  %284 = vmatmul.f32.gmra.mxu2 %v199_v59 }
 0x147   :  { %v259_v41 = vpop.f32.mrf.mxu1 }
 0x148   :  { %v260_v61 = vadd.f32 %v259_v41, %v238_v60 }
 0x14a   :  { %288 = vst [vmem:[#allocation9] sm:$0xff] %v260_v61 }
 0x14d   :  { %v282_v63 = vpop.f32.mrf.mxu2 }
 0x14e   :  { %v283_v0 = vadd.f32 %v282_v63, %v239_v62 }
 0x150   :  { %289 = vst [vmem:[#allocation9 + $0x8] sm:$0xff] %v283_v0 }
 0x155   :  { %v262_v36 = vpop.f32.mrf.mxu3  ;;  %v285_v2 = vpop.f32.mrf.mxu2 }
 0x156   :  { %v263_v1 = vadd.f32 %v262_v36, %v238_v60  ;;  %v286_v3 = vadd.f32 %v285_v2, %v239_v62 }
 0x158   :  { %290 = vst [vmem:[#allocation9 + $0x10] sm:$0xff] %v263_v1 }
 0x159   :  { %291 = vst [vmem:[#allocation9 + $0x18] sm:$0xff] %v286_v3 }
 0x15a   :  { %304 = dma.vmem_to_hbm [thread:$0]  %s297_s13, 512, %s299_s16, [#allocation5], %s452_s9, %s452_s9, %s453_s10  }
 0x15b   :  { %445 = dma.done.wait [#allocation5], 512  }
 0x15c   :  { %446 = vsyncadd [#allocation5], 4294966784 }
 0x15d   :  { %309 = vsyncpa [#allocation4], 1 }
 0x15e   :  { %310 = vsyncpa [#allocation7], 1 }
 0x15f   :  { %311 = vsyncpa [#allocation5], 1 }

</bundles_post_ra>
